<compile_context>
chip_gen: v5e
topology: v5e:2x2
jax: 0.10.0
libtpu: 0.0.40
codegen_flags: <defaults>
</compile_context>

<pallas_src>
import functools

import jax
import jax.numpy as jnp
from jax.experimental import pallas as pl
from jax.experimental.pallas import tpu as pltpu


_C0 = 0.7978845608          # sqrt(2/pi), literal from the PyTorch module
_C1 = 0.044715
_C0_C1 = _C0 * _C1          # folded constant: one fewer VALU multiply / element


def _gelu_fast_kernel(x_ref, o_ref):
    x = x_ref[...]
    xf = x.astype(jnp.float32)                    # f32 math on the VPU / EUP
    x2 = xf * xf
    t = jnp.tanh(xf * (_C0 + _C0_C1 * x2))        # EUP tanh, folded polynomial
    o_ref[...] = (0.5 * xf * (1.0 + t)).astype(o_ref.dtype)


def _sublane_multiple(dtype):
    itemsize = jnp.dtype(dtype).itemsize
    return {4: 8, 2: 16, 1: 32}.get(itemsize, 8)


@functools.lru_cache(maxsize=None)
def _budgets():
    """Per-chip-generation (block_bytes, vmem_limit_bytes)."""
    try:
        vmem = int(pltpu.get_tpu_info().vmem_capacity_bytes)
    except Exception:
        vmem = None
    if vmem is not None and vmem <= 64 * 1024 * 1024:
        # v7x-class: 64 MiB physical VMEM / TC.  4 x 6 MiB in flight = 24 MiB.
        return 6 * 1024 * 1024, 32 * 1024 * 1024
    if vmem is not None:
        # v5e / v6e: 128 MiB physical VMEM.  4 x 8 MiB in flight = 32 MiB.
        return 8 * 1024 * 1024, 64 * 1024 * 1024
    # Unknown backend (e.g. interpret mode): conservative defaults.
    return 4 * 1024 * 1024, 32 * 1024 * 1024


def _choose_columns(shape, n, itemsize, sub, block_bytes):
    """Pick a lane-dense column count C that divides n exactly (no padding)."""
    lane_budget = max(128, (block_bytes // (itemsize * sub)) // 128 * 128)
    last = shape[-1] if len(shape) else n
    if last % 128 == 0 and last <= lane_budget:
        return last                                   # e.g. hidden dims
    if n % 128 == 0:
        for c in (8192, 4096, 2048, 1024, 512, 256, 128):
            if c <= lane_budget and n % c == 0:
                return c
    return None


@jax.jit
def gelu_fast(x):
    """Applies gelu_fast element-wise via a Pallas TPU kernel."""
    orig_shape = x.shape
    dtype = x.dtype
    itemsize = jnp.dtype(dtype).itemsize
    n = x.size
    if n == 0:
        return x
    sub = _sublane_multiple(dtype)
    block_bytes, vmem_limit = _budgets()

    # ---- choose a 2-D slab (rows, C): no pad whenever possible ----
    pad = 0
    C = _choose_columns(orig_shape, n, itemsize, sub, block_bytes)
    if C is not None:
        # Lane-dense no-pad path: metadata-only reshape, unmasked stores.
        rows = n // C
        x2d = x.reshape(rows, C)
    elif x.ndim >= 2 and orig_shape[-1] * itemsize * sub <= block_bytes:
        # Ragged last dim: full-extent lane block (masked lane stores) but
        # still zero extra HBM traffic.
        C = orig_shape[-1]
        rows = n // C
        x2d = x.reshape(rows, C)
    else:
        # TODO(synk): pathological shapes (ragged flat length with an over-large
        # or absent last dim) still pay a full pad + post-slice HBM round trip.
        C = 128
        rows = pl.cdiv(n, C)
        pad = rows * C - n
        x2d = jnp.pad(jnp.ravel(x), (0, pad)).reshape(rows, C)

    # ---- block sizing: ~block_bytes per block, sublane-aligned rows ----
    block_rows = max(sub, (block_bytes // (C * itemsize)) // sub * sub)
    if block_rows >= rows:
        block_rows = rows                 # full-extent block is always legal
    # Give both v7x TensorCores work on medium inputs that would otherwise be
    # a single block (negligible cost on single-TC chips).
    if (pl.cdiv(rows, block_rows) == 1 and rows > 2 * sub
            and n * itemsize >= (1 << 20)):
        block_rows = min(rows, pl.cdiv(pl.cdiv(rows, 2), sub) * sub)
    grid = (pl.cdiv(rows, block_rows),)   # ragged last block handled by Pallas

    cost = pl.CostEstimate(
        flops=10 * n,
        transcendentals=n,
        bytes_accessed=2 * n * itemsize,
    )

    out2d = pl.pallas_call(
        _gelu_fast_kernel,
        out_shape=jax.ShapeDtypeStruct((rows, C), dtype),
        grid_spec=pltpu.PrefetchScalarGridSpec(
            num_scalar_prefetch=0,
            grid=grid,
            in_specs=[pl.BlockSpec((block_rows, C), lambda i: (i, 0))],
            out_specs=pl.BlockSpec((block_rows, C), lambda i: (i, 0)),
        ),
        compiler_params=pltpu.CompilerParams(
            dimension_semantics=("parallel",),   # v7x: shard grid over 2 TCs
            vmem_limit_bytes=vmem_limit,
        ),
        cost_estimate=cost,
    )(x2d)

    if pad:
        return out2d.reshape(rows * C)[:n].reshape(orig_shape)
    return out2d.reshape(orig_shape)


def _gelu_fast_ref(x):
    xf = x.astype(jnp.float32)
    return (0.5 * xf * (1.0 + jnp.tanh(xf * _C0 * (1.0 + _C1 * xf * xf)))).astype(x.dtype)


if __name__ == "__main__":
    key = jax.random.PRNGKey(0)
    k0, k1, k2 = jax.random.split(key, 3)
    # Transformer-style activations [batch, seq, hidden].
    cases = [
        jax.random.normal(k0, (2, 8, 32), dtype=jnp.float32),   # n % 128 == 0 -> divisor fast path
        jax.random.normal(k1, (2, 8, 256), dtype=jnp.float32),  # hidden % 128 == 0 -> lane-dense path
        jax.random.normal(k2, (2, 8, 30), dtype=jnp.float32),   # ragged hidden -> full-extent, no pad
    ]
    for x in cases:
        y = gelu_fast(x)
        jax.block_until_ready(y)
        y_ref = _gelu_fast_ref(x)
        assert y.shape == x.shape and y.dtype == x.dtype
        assert jnp.allclose(y, y_ref, atol=1e-5, rtol=1e-5), float(
            jnp.max(jnp.abs(y.astype(jnp.float32) - y_ref.astype(jnp.float32)))
        )
    print("KERNEL_OK")
</pallas_src>

<mosaic_0001>
module attributes {stable_mosaic.version = 11 : i64} {
  func.func @_gelu_fast_kernel(%arg0: i32, %arg1: memref<1x512xf32, #tpu.memory_space<vmem>>, %arg2: memref<1x512xf32, #tpu.memory_space<vmem>>) attributes {dimension_semantics = [#tpu.dimension_semantics<parallel>], iteration_bounds = array<i64: 1>, scalar_prefetch = 0 : i64, scratch_operands = 0 : i64, tpu.core_type = #tpu.core_type<tc>, window_params = [{transform_indices = @transform_0, window_bounds = array<i64: 1, 512>}, {transform_indices = @transform_1, window_bounds = array<i64: 1, 512>}]} {
    %c0 = arith.constant 0 : index
    %c0_0 = arith.constant 0 : index
    %0 = vector.load %arg1[%c0, %c0_0] : memref<1x512xf32, #tpu.memory_space<vmem>>, vector<1x512xf32>
    %1 = arith.mulf %0, %0 : vector<1x512xf32>
    %cst = arith.constant 0.0356774069 : f32
    %2 = vector.broadcast %cst : f32 to vector<1x512xf32>
    %3 = arith.mulf %2, %1 : vector<1x512xf32>
    %cst_1 = arith.constant 0.797884583 : f32
    %4 = vector.broadcast %cst_1 : f32 to vector<1x512xf32>
    %5 = arith.addf %4, %3 : vector<1x512xf32>
    %6 = arith.mulf %0, %5 : vector<1x512xf32>
    %7 = math.tanh %6 : vector<1x512xf32>
    %cst_2 = arith.constant 5.000000e-01 : f32
    %8 = vector.broadcast %cst_2 : f32 to vector<1x512xf32>
    %9 = arith.mulf %8, %0 : vector<1x512xf32>
    %cst_3 = arith.constant 1.000000e+00 : f32
    %10 = vector.broadcast %cst_3 : f32 to vector<1x512xf32>
    %11 = arith.addf %10, %7 : vector<1x512xf32>
    %12 = arith.mulf %9, %11 : vector<1x512xf32>
    %c0_4 = arith.constant 0 : index
    %c0_5 = arith.constant 0 : index
    %13 = vector.load %arg2[%c0_4, %c0_5] : memref<1x512xf32, #tpu.memory_space<vmem>>, vector<1x512xf32>
    tpu.vector_store %arg2[%c0_4, %c0_5], %12 {strides = array<i32>} : memref<1x512xf32, #tpu.memory_space<vmem>>, vector<1x512xf32>,
    return
  }
  func.func @transform_0(%arg0: i32) -> (i32, i32) {
    %c0_i32 = arith.constant 0 : i32
    %c0_i32_0 = arith.constant 0 : i32
    return %arg0, %c0_i32 : i32, i32
  }
  func.func @transform_1(%arg0: i32) -> (i32, i32) {
    %c0_i32 = arith.constant 0 : i32
    %c0_i32_0 = arith.constant 0 : i32
    return %arg0, %c0_i32 : i32, i32
  }
}

</mosaic_0001>

<bundles_post_ra>
// kernel: gelu_fast.1
= control target key start
LH: loop header
LB: loop body
LE: loop exit
PB: predicated region body
PF: predicated region fallthrough
CT: control target
= control target key end

     0   :  { %v17_v5 = vlaneseq  ;;  %s44_s0 = inlined_call_operand.vmem [shape: f32[1,512], index: 0, kind: input, shape index: {}]   ;;  %s45_s1 = inlined_call_operand.vmem [shape: f32[1,512], index: 1, kind: output, shape index: {}]  }
   0x1   :  { %v8_v0 = vld [vmem:[%s44_s0] sm:$0xf] }
   0x2   :  { %v9_v1 = vmul.f32 %v8_v0, %v8_v0  ;;  %v14_v6 = vmul.f32 0.5, %v8_v0  ;;  %vm19_vm0 = vcmp.lt.s32.totalorder %v17_v5, 512 }
   0x4   :  { %v10_v2 = vmul.f32 0.035677407, %v9_v1 }
   0x6   :  { %v11_v3 = vadd.f32 0.7978846, %v10_v2 }
   0x8   :  { %v12_v4 = vmul.f32 %v11_v3, %v8_v0 }
   0xa   :  { %26 = vtanh.f32 %v12_v4 }
  0x10   :  { %v27_v7 = vpop.eup %26 }
  0x11   :  { %v15_v8 = vadd.f32 1.0, %v27_v7 }
  0x13   :  { %v16_v9 = vmul.f32 %v15_v8, %v14_v6 }
  0x15   :  { %21 = vst.msk [vmem:[%s45_s1] sm:$0xf] %vm19_vm0, %v16_v9 }

</bundles_post_ra>
